<compile_context>
chip_gen: v7x
topology: tpu7x:2x2x1
jax: 0.10.0
libtpu: 0.0.40
codegen_flags: <defaults>
</compile_context>

<pallas_src>
import functools
import math

import jax
import jax.numpy as jnp
from jax.experimental import pallas as pl
from jax.experimental.pallas import tpu as pltpu


# ----------------------------------------------------------------------------
# small helpers
# ----------------------------------------------------------------------------
def _round_up(x: int, m: int) -> int:
    return ((x + m - 1) // m) * m


def _pad2(a, rows: int, cols: int):
    r, c = a.shape
    if r == rows and c == cols:
        return a
    return jnp.pad(a, ((0, rows - r), (0, cols - c)))


_CONTRACT_LAST_LAST = (((1,), (1,)), ((), ()))   # x:(M,K) · w:(N,K) -> (M,N)
_CONTRACT_LAST_FIRST = (((1,), (0,)), ((), ()))  # p:(M,K) · v:(K,N) -> (M,N)


# ----------------------------------------------------------------------------
# Pallas kernels
# ----------------------------------------------------------------------------
def _matmul_kernel(x_ref, w_ref, o_ref, acc_ref):
    """Tiled y = x @ W^T with f32 accumulator.  x:(tm,tk) w:(tn,tk) o:(tm,tn)."""
    @pl.when(pl.program_id(2) == 0)
    def _():
        acc_ref[...] = jnp.zeros_like(acc_ref)

    acc_ref[...] += jax.lax.dot_general(
        x_ref[...], w_ref[...], _CONTRACT_LAST_LAST,
        preferred_element_type=jnp.float32)

    @pl.when(pl.program_id(2) == pl.num_programs(2) - 1)
    def _():
        o_ref[...] = acc_ref[...].astype(o_ref.dtype)


def _rms_matmul_kernel(x_ref, g_ref, w_ref, o_ref, *, inv_d, eps):
    """y = RMSNorm(x; g) @ W^T.  Full K (=d_model) per tile, grid over (M, N)."""
    x = x_ref[...]
    xf = x.astype(jnp.float32)
    ms = jnp.sum(xf * xf, axis=-1, keepdims=True) * inv_d
    h = (xf * jax.lax.rsqrt(ms + eps) * g_ref[...].astype(jnp.float32)).astype(x.dtype)
    o_ref[...] = jax.lax.dot_general(
        h, w_ref[...], _CONTRACT_LAST_LAST,
        preferred_element_type=jnp.float32).astype(o_ref.dtype)


def _rms_swiglu_kernel(x_ref, g_ref, w1_ref, w3_ref, w2_ref, o_ref, acc_ref,
                       *, inv_d, eps):
    """y = w2( silu(h @ w1^T) * (h @ w3^T) ), h = RMSNorm(x; g).
    Grid (M tiles, F tiles); F is the reduction axis for the w2 contraction."""
    @pl.when(pl.program_id(1) == 0)
    def _():
        acc_ref[...] = jnp.zeros_like(acc_ref)

    x = x_ref[...]
    xf = x.astype(jnp.float32)
    ms = jnp.sum(xf * xf, axis=-1, keepdims=True) * inv_d
    h = (xf * jax.lax.rsqrt(ms + eps) * g_ref[...].astype(jnp.float32)).astype(x.dtype)

    a = jax.lax.dot_general(h, w1_ref[...], _CONTRACT_LAST_LAST,
                            preferred_element_type=jnp.float32)
    b = jax.lax.dot_general(h, w3_ref[...], _CONTRACT_LAST_LAST,
                            preferred_element_type=jnp.float32)
    hid = (a * jax.nn.sigmoid(a) * b).astype(w2_ref.dtype)

    acc_ref[...] += jax.lax.dot_general(hid, w2_ref[...], _CONTRACT_LAST_LAST,
                                        preferred_element_type=jnp.float32)

    @pl.when(pl.program_id(1) == pl.num_programs(1) - 1)
    def _():
        o_ref[...] = acc_ref[...].astype(o_ref.dtype)


def _flash_kernel(q_ref, k_ref, v_ref, o_ref, m_sc, l_sc, acc_sc,
                  *, scale, tq, tkv):
    """Flash-style causal attention for one (batch*head) over KV tiles."""
    qi = pl.program_id(1)
    ki = pl.program_id(2)

    @pl.when(ki == 0)
    def _():
        m_sc[...] = jnp.full(m_sc.shape, -jnp.inf, jnp.float32)
        l_sc[...] = jnp.zeros(l_sc.shape, jnp.float32)
        acc_sc[...] = jnp.zeros(acc_sc.shape, jnp.float32)

    # Skip KV tiles that are entirely above the causal diagonal.
    @pl.when(ki * tkv < (qi + 1) * tq)
    def _():
        q = q_ref[0]
        k = k_ref[0]
        v = v_ref[0]
        s = jax.lax.dot_general(q, k, _CONTRACT_LAST_LAST,
                                preferred_element_type=jnp.float32) * scale
        row = qi * tq + jax.lax.broadcasted_iota(jnp.int32, s.shape, 0)
        col = ki * tkv + jax.lax.broadcasted_iota(jnp.int32, s.shape, 1)
        s = jnp.where(col <= row, s, jnp.float32(-1e30))

        m_new = jnp.maximum(m_sc[...], jnp.max(s, axis=-1, keepdims=True))
        alpha = jnp.exp(m_sc[...] - m_new)
        p = jnp.exp(s - m_new)
        l_sc[...] = alpha * l_sc[...] + jnp.sum(p, axis=-1, keepdims=True)
        acc_sc[...] = alpha * acc_sc[...] + jax.lax.dot_general(
            p.astype(v.dtype), v, _CONTRACT_LAST_FIRST,
            preferred_element_type=jnp.float32)
        m_sc[...] = m_new

    @pl.when(ki == pl.num_programs(2) - 1)
    def _():
        o_ref[0] = (acc_sc[...] * pl.reciprocal(l_sc[...], approx=True)
                    ).astype(o_ref.dtype)


# ----------------------------------------------------------------------------
# Pallas wrappers (pad to (8,128)-aligned tiles, slice back)
# ----------------------------------------------------------------------------
def linear(x, w, *, tm=256, tn=256, tk=512):
    """x: (..., K), w: (N, K) -> (..., N), tiled y = x @ W^T."""
    lead = x.shape[:-1]
    M = math.prod(lead)
    K = x.shape[-1]
    N = w.shape[0]

    tm_ = min(tm, _round_up(M, 8))
    tn_ = min(tn, _round_up(N, 128))
    tk_ = min(tk, _round_up(K, 128))
    Mp, Np, Kp = _round_up(M, tm_), _round_up(N, tn_), _round_up(K, tk_)

    x2 = _pad2(x.reshape(M, K), Mp, Kp)
    w2 = _pad2(w, Np, Kp)

    out = pl.pallas_call(
        _matmul_kernel,
        out_shape=jax.ShapeDtypeStruct((Mp, Np), x.dtype),
        grid=(Mp // tm_, Np // tn_, Kp // tk_),
        in_specs=[pl.BlockSpec((tm_, tk_), lambda i, j, k: (i, k)),
                  pl.BlockSpec((tn_, tk_), lambda i, j, k: (j, k))],
        out_specs=pl.BlockSpec((tm_, tn_), lambda i, j, k: (i, j)),
        scratch_shapes=[pltpu.VMEM((tm_, tn_), jnp.float32)],
        compiler_params=pltpu.CompilerParams(
            dimension_semantics=("parallel", "parallel", "arbitrary")),
    )(x2, w2)
    return out[:M, :N].reshape(*lead, N)


def rms_linear(x, g, w, *, eps=1e-5, tm=256, tn=256):
    """Fused RMSNorm + linear: y = RMSNorm(x; g) @ W^T.  x:(...,D), w:(N,D)."""
    lead = x.shape[:-1]
    M = math.prod(lead)
    D = x.shape[-1]
    N = w.shape[0]

    Dp = _round_up(D, 128)
    tm_ = min(tm, _round_up(M, 8))
    tn_ = min(tn, _round_up(N, 128))
    Mp, Np = _round_up(M, tm_), _round_up(N, tn_)

    x2 = _pad2(x.reshape(M, D), Mp, Dp)
    g2 = _pad2(g.reshape(1, D), 1, Dp)
    w2 = _pad2(w, Np, Dp)

    out = pl.pallas_call(
        functools.partial(_rms_matmul_kernel, inv_d=1.0 / D, eps=eps),
        out_shape=jax.ShapeDtypeStruct((Mp, Np), x.dtype),
        grid=(Mp // tm_, Np // tn_),
        in_specs=[pl.BlockSpec((tm_, Dp), lambda i, j: (i, 0)),
                  pl.BlockSpec((1, Dp), lambda i, j: (0, 0)),
                  pl.BlockSpec((tn_, Dp), lambda i, j: (j, 0))],
        out_specs=pl.BlockSpec((tm_, tn_), lambda i, j: (i, j)),
        compiler_params=pltpu.CompilerParams(
            dimension_semantics=("parallel", "parallel")),
    )(x2, g2, w2)
    return out[:M, :N].reshape(*lead, N)


def rms_swiglu(x, g, w1, w3, w2, *, eps=1e-5, tm=256, tf=512):
    """Fused RMSNorm + SwiGLU FFN, tiled over the FFN dim F (reduction for w2)."""
    lead = x.shape[:-1]
    M = math.prod(lead)
    D = x.shape[-1]
    F = w1.shape[0]

    Dp = _round_up(D, 128)
    tm_ = min(tm, _round_up(M, 8))
    tf_ = min(tf, _round_up(F, 128))
    Mp, Fp = _round_up(M, tm_), _round_up(F, tf_)

    x2 = _pad2(x.reshape(M, D), Mp, Dp)
    g2 = _pad2(g.reshape(1, D), 1, Dp)
    w1p = _pad2(w1, Fp, Dp)
    w3p = _pad2(w3, Fp, Dp)
    w2p = _pad2(w2, Dp, Fp)

    out = pl.pallas_call(
        functools.partial(_rms_swiglu_kernel, inv_d=1.0 / D, eps=eps),
        out_shape=jax.ShapeDtypeStruct((Mp, Dp), x.dtype),
        grid=(Mp // tm_, Fp // tf_),
        in_specs=[pl.BlockSpec((tm_, Dp), lambda i, f: (i, 0)),
                  pl.BlockSpec((1, Dp), lambda i, f: (0, 0)),
                  pl.BlockSpec((tf_, Dp), lambda i, f: (f, 0)),
                  pl.BlockSpec((tf_, Dp), lambda i, f: (f, 0)),
                  pl.BlockSpec((Dp, tf_), lambda i, f: (0, f))],
        out_specs=pl.BlockSpec((tm_, Dp), lambda i, f: (i, 0)),
        scratch_shapes=[pltpu.VMEM((tm_, Dp), jnp.float32)],
        compiler_params=pltpu.CompilerParams(
            dimension_semantics=("parallel", "arbitrary")),
    )(x2, g2, w1p, w3p, w2p)
    return out[:M, :D].reshape(x.shape)


def flash_causal_mha(q, k, v):
    """q,k: (B,H,S,dk), v: (B,H,S,dv) -> (B,H,S,dv).  Online-softmax flash attention."""
    B, H, S, dk = q.shape
    dv = v.shape[-1]
    BH = B * H
    qf = q.reshape(BH, S, dk)
    kf = k.reshape(BH, S, dk)
    vf = v.reshape(BH, S, dv)

    tq = 128 if S % 128 == 0 else S
    tkv = 128 if S % 128 == 0 else S
    scale = 1.0 / math.sqrt(dk)

    out = pl.pallas_call(
        functools.partial(_flash_kernel, scale=scale, tq=tq, tkv=tkv),
        out_shape=jax.ShapeDtypeStruct((BH, S, dv), q.dtype),
        grid=(BH, S // tq, S // tkv),
        in_specs=[pl.BlockSpec((1, tq, dk), lambda b, i, j: (b, i, 0)),
                  pl.BlockSpec((1, tkv, dk), lambda b, i, j: (b, j, 0)),
                  pl.BlockSpec((1, tkv, dv), lambda b, i, j: (b, j, 0))],
        out_specs=pl.BlockSpec((1, tq, dv), lambda b, i, j: (b, i, 0)),
        scratch_shapes=[pltpu.VMEM((tq, 1), jnp.float32),
                        pltpu.VMEM((tq, 1), jnp.float32),
                        pltpu.VMEM((tq, dv), jnp.float32)],
        compiler_params=pltpu.CompilerParams(
            dimension_semantics=("parallel", "parallel", "arbitrary")),
    )(qf, kf, vf)
    return out.reshape(B, H, S, dv)


# ----------------------------------------------------------------------------
# Plain-JAX glue: embedding gather, RoPE tables / apply, head reshapes
# ----------------------------------------------------------------------------
def rope_tables(seq_len, d, theta):
    inv_freq = 1.0 / (theta ** (jnp.arange(0, d, 2, dtype=jnp.float32) / d))  # (d/2,)
    ang = jnp.arange(seq_len, dtype=jnp.float32)[:, None] * inv_freq          # (S, d/2)
    return jnp.cos(ang), jnp.sin(ang)


def apply_rope(x, cos, sin):
    """x: (B, H, S, d); cos/sin: (S, d/2) — rotate interleaved pairs."""
    # TODO(synk): fold RoPE into the attention kernel with pltpu.roll to avoid the
    # strided-slice / stack round-trip in XLA.
    c = cos[None, None]
    s = sin[None, None]
    x1, x2 = x[..., 0::2], x[..., 1::2]
    r1 = x1 * c - x2 * s
    r2 = x1 * s + x2 * c
    return jnp.stack([r1, r2], axis=-1).reshape(x.shape).astype(x.dtype)


def transformer_block(x, rope_cs, p, num_heads, use_rope):
    B, S, d_model = x.shape
    d_k = p["wq"].shape[0] // num_heads
    d_v = p["wv"].shape[0] // num_heads
    nq, nk = p["wq"].shape[0], p["wk"].shape[0]

    # --- attention sub-layer: fused ln1 + concatenated QKV projection ---
    wqkv = jnp.concatenate([p["wq"], p["wk"], p["wv"]], axis=0)   # (H*dk*2 + H*dv, D)
    qkv = rms_linear(x, p["ln1"], wqkv)                           # (B, S, ...)
    q = qkv[..., :nq].reshape(B, S, num_heads, d_k).transpose(0, 2, 1, 3)
    k = qkv[..., nq:nq + nk].reshape(B, S, num_heads, d_k).transpose(0, 2, 1, 3)
    v = qkv[..., nq + nk:].reshape(B, S, num_heads, d_v).transpose(0, 2, 1, 3)
    if use_rope:
        cos, sin = rope_cs
        q = apply_rope(q, cos, sin)
        k = apply_rope(k, cos, sin)
    attn = flash_causal_mha(q, k, v)                              # (B, H, S, dv)
    # TODO(synk): lane-dense per-head output layout (B,S,H*dv) sliced in the BlockSpec
    # would remove this transpose, but needs 128-aligned d_v.
    attn = attn.transpose(0, 2, 1, 3).reshape(B, S, num_heads * d_v)
    x = x + linear(attn, p["wo"])

    # --- feed-forward sub-layer: fused ln2 + SwiGLU ---
    x = x + rms_swiglu(x, p["ln2"], p["w1"], p["w3"], p["w2"])
    return x


def transformer_forward(token_indices, params, *, num_heads, theta, use_rope):
    B, S = token_indices.shape
    d_k = params["layers"][0]["wq"].shape[0] // num_heads
    rope_cs = rope_tables(S, d_k, theta) if use_rope else None

    # Embedding gather stays in XLA (data-dependent row gather).
    x = jnp.take(params["embedding"], token_indices, axis=0)      # (B, S, d_model)
    for layer in params["layers"]:
        x = transformer_block(x, rope_cs, layer, num_heads, use_rope)
    # Final RMSNorm fused into the lm-head projection.
    logits = rms_linear(x, params["final_ln"], params["w_out"])   # (B, S, vocab)
    return logits


# ----------------------------------------------------------------------------
# Deterministic parameter construction (synthetic; no checkpoint load)
# ----------------------------------------------------------------------------
def init_params(key, vocab_size, num_layers, d_model, num_heads, d_ff,
                d_k=None, d_v=None, dtype=jnp.float32):
    d_k = d_k if d_k is not None else d_model // num_heads
    d_v = d_v if d_v is not None else d_model // num_heads

    def nrm(k, shape):
        return (0.02 * jax.random.normal(k, shape, dtype=jnp.float32)).astype(dtype)

    keys = jax.random.split(key, 2 + num_layers)
    params = {
        "embedding": nrm(keys[0], (vocab_size, d_model)),
        "w_out": nrm(keys[1], (vocab_size, d_model)),
        "final_ln": jnp.ones((d_model,), dtype),
        "layers": [],
    }
    for l in range(num_layers):
        lk = jax.random.split(keys[2 + l], 7)
        params["layers"].append({
            "ln1": jnp.ones((d_model,), dtype),
            "ln2": jnp.ones((d_model,), dtype),
            "wq": nrm(lk[0], (num_heads * d_k, d_model)),
            "wk": nrm(lk[1], (num_heads * d_k, d_model)),
            "wv": nrm(lk[2], (num_heads * d_v, d_model)),
            "wo": nrm(lk[3], (d_model, num_heads * d_v)),
            "w1": nrm(lk[4], (d_ff, d_model)),
            "w3": nrm(lk[5], (d_ff, d_model)),
            "w2": nrm(lk[6], (d_model, d_ff)),
        })
    return params


# ----------------------------------------------------------------------------
if __name__ == "__main__":
    vocab_size = 64
    context_length = 16
    num_layers = 2
    d_model = 32
    num_heads = 4
    d_ff = 64
    theta = 10000.0
    use_rope = True

    batch, seq = 2, 8

    key = jax.random.PRNGKey(0)
    pkey, tkey = jax.random.split(key)
    params = init_params(pkey, vocab_size, num_layers, d_model, num_heads, d_ff)
    token_indices = jax.random.randint(tkey, (batch, seq), 0, vocab_size, dtype=jnp.int32)

    logits = transformer_forward(token_indices, params,
                                 num_heads=num_heads, theta=theta, use_rope=use_rope)
    logits = jax.block_until_ready(logits)
    assert logits.shape == (batch, seq, vocab_size), logits.shape
    assert bool(jnp.all(jnp.isfinite(logits)))
    print("KERNEL_OK")
</pallas_src>

<mosaic_0001>
module attributes {stable_mosaic.version = 11 : i64} {
  func.func @_rms_matmul_kernel(%arg0: i32, %arg1: i32, %arg2: memref<16x128xf32, #tpu.memory_space<vmem>>, %arg3: memref<1x128xf32, #tpu.memory_space<vmem>>, %arg4: memref<128x128xf32, #tpu.memory_space<vmem>>, %arg5: memref<16x128xf32, #tpu.memory_space<vmem>>) attributes {dimension_semantics = [#tpu.dimension_semantics<parallel>, #tpu.dimension_semantics<parallel>], iteration_bounds = array<i64: 1, 1>, scalar_prefetch = 0 : i64, scratch_operands = 0 : i64, tpu.core_type = #tpu.core_type<tc>, window_params = [{transform_indices = @transform_0, window_bounds = array<i64: 16, 128>}, {pipeline_mode = #tpu.pipeline_mode<synchronous>, transform_indices = @transform_1, window_bounds = array<i64: 1, 128>}, {transform_indices = @transform_2, window_bounds = array<i64: 128, 128>}, {transform_indices = @transform_3, window_bounds = array<i64: 16, 128>}]} {
    %c0 = arith.constant 0 : index
    %c0_0 = arith.constant 0 : index
    %0 = vector.load %arg2[%c0, %c0_0] : memref<16x128xf32, #tpu.memory_space<vmem>>, vector<16x128xf32>
    %1 = arith.mulf %0, %0 : vector<16x128xf32>
    %cst = arith.constant dense<0.000000e+00> : vector<16xf32>
    %2 = vector.multi_reduction <add>, %1, %cst [1] : vector<16x128xf32> to vector<16xf32>
    %3 = vector.shape_cast %2 : vector<16xf32> to vector<16x1xf32>
    %cst_1 = arith.constant 3.125000e-02 : f32
    %4 = vector.broadcast %cst_1 : f32 to vector<16x1xf32>
    %5 = arith.mulf %3, %4 : vector<16x1xf32>
    %cst_2 = arith.constant 9.99999974E-6 : f32
    %6 = vector.broadcast %cst_2 : f32 to vector<16x1xf32>
    %7 = arith.addf %5, %6 : vector<16x1xf32>
    %8 = math.rsqrt %7 : vector<16x1xf32>
    %9 = vector.broadcast %8 : vector<16x1xf32> to vector<16x128xf32>
    %10 = arith.mulf %0, %9 : vector<16x128xf32>
    %c0_3 = arith.constant 0 : index
    %c0_4 = arith.constant 0 : index
    %11 = vector.load %arg3[%c0_3, %c0_4] : memref<1x128xf32, #tpu.memory_space<vmem>>, vector<1x128xf32>
    %12 = vector.broadcast %11 : vector<1x128xf32> to vector<16x128xf32>
    %13 = arith.mulf %10, %12 : vector<16x128xf32>
    %c0_5 = arith.constant 0 : index
    %c0_6 = arith.constant 0 : index
    %14 = vector.load %arg4[%c0_5, %c0_6] : memref<128x128xf32, #tpu.memory_space<vmem>>, vector<128x128xf32>
    %cst_7 = arith.constant dense<0.000000e+00> : vector<16x128xf32>
    %15 = tpu.matmul %13, %14, %cst_7 {dimension_numbers = #tpu.dot_dimension_numbers<[1], [1], [0], [0], [0, 0, 1, 0], [], []>} : vector<16x128xf32>, vector<128x128xf32>, vector<16x128xf32> -> vector<16x128xf32>
    %c0_8 = arith.constant 0 : index
    %c0_9 = arith.constant 0 : index
    %16 = vector.load %arg5[%c0_8, %c0_9] : memref<16x128xf32, #tpu.memory_space<vmem>>, vector<16x128xf32>
    tpu.vector_store %arg5[%c0_8, %c0_9], %15 {strides = array<i32>} : memref<16x128xf32, #tpu.memory_space<vmem>>, vector<16x128xf32>,
    return
  }
  func.func @transform_0(%arg0: i32, %arg1: i32) -> (i32, i32) {
    %c0_i32 = arith.constant 0 : i32
    %c0_i32_0 = arith.constant 0 : i32
    return %arg0, %c0_i32 : i32, i32
  }
  func.func @transform_1(%arg0: i32, %arg1: i32) -> (i32, i32) {
    %c0_i32 = arith.constant 0 : i32
    %c0_i32_0 = arith.constant 0 : i32
    %c0_i32_1 = arith.constant 0 : i32
    return %c0_i32, %c0_i32_0 : i32, i32
  }
  func.func @transform_2(%arg0: i32, %arg1: i32) -> (i32, i32) {
    %c0_i32 = arith.constant 0 : i32
    %c0_i32_0 = arith.constant 0 : i32
    return %arg1, %c0_i32 : i32, i32
  }
  func.func @transform_3(%arg0: i32, %arg1: i32) -> (i32, i32) {
    %c0_i32 = arith.constant 0 : i32
    return %arg0, %arg1 : i32, i32
  }
}

</mosaic_0001>

<bundles_post_ra>
// kernel: tpu_custom_call.1
= control target key start
LH: loop header
LB: loop body
LE: loop exit
PB: predicated region body
PF: predicated region fallthrough
CT: control target
= control target key end

     0   :  { %8 = vsyncpa [#allocation3], 0  ;;  %s419_s0 = inlined_call_operand.hbm [shape: f32[16,128], index: 0, kind: input, shape index: {}]   ;;  %s420_s1 = inlined_call_operand.vmem [shape: f32[1,128], index: 1, kind: input, shape index: {}]   ;;  %s421_s2 = inlined_call_operand.hbm [shape: f32[128,128], index: 2, kind: input, shape index: {}]   ;;  %s422_s3 = inlined_call_operand.hbm [shape: f32[16,128], index: 3, kind: output, shape index: {}]  }
   0x1   :  { %9 = vsyncpa [#allocation6], 0 }
   0x2   :  { %10 = vsyncpa [#allocation4], 0  ;;  %s346_s12 = smov [#allocation2]   ;;  %s274_s16 = scalar_lea.hbm %s419_s0, 256 }
   0x3   :  { %s16_s13 = sshll.u32 %s346_s12, 4  ;;  %p275_p0 = scmp.ne.s32.totalorder %s419_s0, %s274_s16  ;;  %s17_s13 = int_to_ptr.vmem [resolvable:$true] %s16_s13 }
   0x4   :  { %p278_p1 = scmp.lt.u32.totalorder %s274_s16, %s419_s0 }
   0x6   :  { %p280_p2 = pnand %p278_p1, %p275_p0 }
   0x8   :  { %283 = shalt.err (!%p280_p2)
}
   0x9   :  { %s284_s21 = scalar_lea.vmem %s17_s13, 256  ;;  %p289_p4 = scmp.lt.s32.totalorder %s17_s13, %s17_s13 }
   0xa   :  { %p285_p3 = scmp.ne.s32.totalorder %s17_s13, %s284_s21  ;;  %p290_p5 = scmp.lt.s32.totalorder %s284_s21, %s284_s21 }
   0xc   :  { %p291_p6 = por %p290_p5, %p289_p4 }
   0xe   :  { %p292_p7 = pnand %p291_p6, %p285_p3 }
  0x10   :  { %295 = shalt.err (!%p292_p7)
}
  0x11   :  { %s347_s22 = smov 128   ;;  %s348_s23 = smov 8  }
  0x12   :  { %22 = dma.hbm_to_vmem [thread:$0]  %s419_s0, 256, %s17_s13, [#allocation3], %s347_s22, %s347_s22, %s348_s23  }
  0x13   :  { %s349_s26 = smov [#allocation5]   ;;  %s296_s30 = scalar_lea.hbm %s421_s2, 2048 }
  0x14   :  { %s30_s27 = sshll.u32 %s349_s26, 4  ;;  %p297_p8 = scmp.ne.s32.totalorder %s421_s2, %s296_s30  ;;  %s31_s27 = int_to_ptr.vmem [resolvable:$true] %s30_s27 }
  0x15   :  { %p300_p9 = scmp.lt.u32.totalorder %s296_s30, %s421_s2 }
  0x17   :  { %p302_p10 = pnand %p300_p9, %p297_p8 }
  0x19   :  { %305 = shalt.err (!%p302_p10)
}
  0x1a   :  { %s306_s8 = scalar_lea.vmem %s31_s27, 2048  ;;  %p311_p12 = scmp.lt.s32.totalorder %s31_s27, %s31_s27 }
  0x1b   :  { %p307_p11 = scmp.ne.s32.totalorder %s31_s27, %s306_s8  ;;  %p312_p13 = scmp.lt.s32.totalorder %s306_s8, %s306_s8 }
  0x1d   :  { %p313_p0 = por %p312_p13, %p311_p12 }
  0x1f   :  { %p314_p1 = pnand %p313_p0, %p307_p11 }
  0x21   :  { %317 = shalt.err (!%p314_p1)
}
  0x22   :  { %36 = dma.hbm_to_vmem [thread:$0]  %s421_s2, 2048, %s31_s27, [#allocation6], %s347_s22, %s347_s22, %s348_s23  }
  0x23   :  { %340 = dma.done.wait [#allocation3], 256  }
  0x24   :  { %341 = vsyncadd [#allocation3], 4294967040 }
  0x25   :  { %342 = dma.done.wait [#allocation6], 2048  }
  0x26   :  { %343 = vsyncadd [#allocation6], 4294965248  ;;  %v43_v0 = vld [vmem:[#allocation2] sm:$0xff]  ;;  %v44_v1 = vld [vmem:[#allocation2 + $0x8] sm:$0xff]  ;;  %s350_s11 = smov [#allocation7]  }
  0x27   :  { %v68_v2 = vld [vmem:[#allocation5] sm:$0xff]  ;;  %v45_v3 = vmul.f32 %v43_v0, %v43_v0  ;;  %v69_v4 = vld [vmem:[#allocation5 + $0x8] sm:$0xff]  ;;  %v70_v5 = vld [vmem:[#allocation5 + $0x10] sm:$0xff]  ;;  %v46_v9 = vmul.f32 %v44_v1, %v44_v1  ;;  %s166_s12 = sshll.u32 %s350_s11, 4  ;;  %s167_s12 = int_to_ptr.vmem [resolvable:$true] %s166_s12 }
  0x28   :  { %v71_v6 = vld [vmem:[#allocation5 + $0x18] sm:$0xff]  ;;  %v233_v7 = vpack.c.bf16 %v69_v4, %v68_v2  ;;  %v72_v10 = vld [vmem:[#allocation5 + $0x20] sm:$0xff]  ;;  %v73_v11 = vld [vmem:[#allocation5 + $0x28] sm:$0xff]  ;;  %s318_s13 = scalar_lea.vmem %s167_s12, 256  ;;  %p323_p3 = scmp.lt.s32.totalorder %s167_s12, %s167_s12 }
  0x29   :  { %v237_v8 = vpack.c.bf16 %v71_v6, %v70_v5  ;;  %47 = vadd.xlane.f32.xlu0 %v45_v3  ;;  %v241_v12 = vpack.c.bf16 %v73_v11, %v72_v10  ;;  %v74_v13 = vld [vmem:[#allocation5 + $0x30] sm:$0xff]  ;;  %v75_v14 = vld [vmem:[#allocation5 + $0x38] sm:$0xff]  ;;  %v76_v16 = vld [vmem:[#allocation5 + $0x40] sm:$0xff]  ;;  %p319_p2 = scmp.ne.s32.totalorder %s167_s12, %s318_s13  ;;  %p324_p4 = scmp.lt.s32.totalorder %s318_s13, %s318_s13 }
  0x2a   :  { %234 = vmatprep.subr.bf16.mxu0 %v233_v7  ;;  %v245_v15 = vpack.c.bf16 %v75_v14, %v74_v13  ;;  %v77_v17 = vld [vmem:[#allocation5 + $0x48] sm:$0xff]  ;;  %v78_v19 = vld [vmem:[#allocation5 + $0x50] sm:$0xff]  ;;  %v79_v20 = vld [vmem:[#allocation5 + $0x58] sm:$0xff] }
  0x2b   :  { %236 = vmatpush3.bf16.xpose.msra.mxu0 %v233_v7  ;;  %v249_v18 = vpack.c.bf16 %v77_v17, %v76_v16  ;;  %v253_v21 = vpack.c.bf16 %v79_v20, %v78_v19  ;;  %v80_v22 = vld [vmem:[#allocation5 + $0x60] sm:$0xff]  ;;  %v81_v23 = vld [vmem:[#allocation5 + $0x68] sm:$0xff]  ;;  %v82_v25 = vld [vmem:[#allocation5 + $0x70] sm:$0xff]  ;;  %p325_p5 = por %p324_p4, %p323_p3 }
  0x2c   :  { %238 = vmatprep.subr.bf16.mxu0 %v237_v8  ;;  %v257_v24 = vpack.c.bf16 %v81_v23, %v80_v22  ;;  %v83_v26 = vld [vmem:[#allocation5 + $0x78] sm:$0xff]  ;;  %v179_v35 = vld [vmem:[%s420_s1] ss:$0 sm:$0xff] }
  0x2d   :  { %49 = vadd.xlane.f32.xlu0 %v46_v9  ;;  %v261_v27 = vpack.c.bf16 %v83_v26, %v82_v25  ;;  %p326_p6 = pnand %p325_p5, %p319_p2 }
  0x33   :  { %240 = vmatpush3.bf16.xpose.msra.mxu0 %v237_v8 }
  0x34   :  { %242 = vmatprep.subr.bf16.mxu0 %v241_v12 }
  0x3b   :  { %244 = vmatpush3.bf16.xpose.msra.mxu0 %v241_v12 }
  0x3c   :  { %246 = vmatprep.subr.bf16.mxu0 %v245_v15 }
  0x43   :  { %248 = vmatpush3.bf16.xpose.msra.mxu0 %v245_v15 }
  0x44   :  { %250 = vmatprep.subr.bf16.mxu0 %v249_v18 }
  0x4b   :  { %252 = vmatpush3.bf16.xpose.msra.mxu0 %v249_v18 }
  0x4c   :  { %254 = vmatprep.subr.bf16.mxu0 %v253_v21 }
  0x53   :  { %256 = vmatpush3.bf16.xpose.msra.mxu0 %v253_v21 }
  0x54   :  { %258 = vmatprep.subr.bf16.mxu0 %v257_v24 }
  0x5b   :  { %260 = vmatpush3.bf16.xpose.msra.mxu0 %v257_v24 }
  0x5c   :  { %262 = vmatprep.subr.bf16.mxu0 %v261_v27 }
  0x63   :  { %264 = vmatpush3.bf16.xpose.msra.mxu0 %v261_v27 }
  0xb6   :  { %v48_v28 = vpop.xlane.xlu0 %47 }
  0xb7   :  { %v51_v29 = vmul.f32 0.03125, %v48_v28 }
  0xb9   :  { %v53_v30 = vadd.f32 1e-05, %v51_v29 }
  0xba   :  { %v50_v31 = vpop.xlane.xlu0 %49 }
  0xbb   :  { %270 = vrsqrt.f32 %v53_v30  ;;  %v52_v32 = vmul.f32 0.03125, %v50_v31 }
  0xbd   :  { %v54_v33 = vadd.f32 1e-05, %v52_v32 }
  0xbf   :  { %272 = vrsqrt.f32 %v54_v33 }
  0xc5   :  { %v271_v34 = vpop.eup %270 }
  0xc6   :  { %v57_v36 = vmul.f32 %v271_v34, %v43_v0 }
  0xc8   :  { %v66_v37 = vmul.f32 %v179_v35, %v57_v36 }
  0xc9   :  { %v273_v38 = vpop.eup %272 }
  0xca   :  { %v58_v39 = vmul.f32 %v273_v38, %v44_v1  ;;  %230 = vmatprep.mubr.f32.mxu0 %v66_v37 }
  0xcc   :  { %v67_v40 = vmul.f32 %v179_v35, %v58_v39 }
  0xce   :  { %231 = vmatmul.mubr.f32.vlgmr.msra.gmra.mrb[0].mxu0 %v67_v40 }
 0x1a1   :  { %v232_v41 = vpop.f32.mrb[0].mxu0 }
 0x1a2   :  { %160 = vst [vmem:[#allocation7 + $0x8] sm:$0xff] %v232_v41  ;;  %v150_v42 = vpop.f32.mrb[1].mxu0 }
 0x1a3   :  { %159 = vst [vmem:[#allocation7] sm:$0xff] %v150_v42 }
 0x1a4   :  { %329 = shalt.err (!%p326_p6)
}
 0x1a5   :  { %s330_s15 = scalar_lea.hbm %s422_s3, 256 }
 0x1a6   :  { %p331_p7 = scmp.ne.s32.totalorder %s422_s3, %s330_s15  ;;  %p334_p8 = scmp.lt.u32.totalorder %s330_s15, %s422_s3 }
 0x1a8   :  { %p336_p9 = pnand %p334_p8, %p331_p7 }
 0x1aa   :  { %339 = shalt.err (!%p336_p9)
}
 0x1ab   :  { %172 = dma.vmem_to_hbm [thread:$0]  %s167_s12, 256, %s422_s3, [#allocation4], %s347_s22, %s347_s22, %s348_s23  }
 0x1ac   :  { %344 = dma.done.wait [#allocation4], 256  }
 0x1ad   :  { %345 = vsyncadd [#allocation4], 4294967040 }
 0x1ae   :  { %176 = vsyncpa [#allocation3], 1 }
 0x1af   :  { %177 = vsyncpa [#allocation6], 1 }
 0x1b0   :  { %178 = vsyncpa [#allocation4], 1 }

</bundles_post_ra>
